<compile_context>
chip_gen: v7x
topology: tpu7x:2x2x1
jax: 0.10.0
libtpu: 0.0.40
codegen_flags: <defaults>
</compile_context>

<pallas_src>
import functools

import jax
import jax.numpy as jnp
from jax import lax
from jax.experimental import pallas as pl
from jax.experimental.pallas import tpu as pltpu


def fused_kernel(patches_ref, wc_ref, cb_ref, pool_ref,
                 w1_ref, b1_ref, w2_ref, b2_ref, o_ref):
    # patches_ref : (Kp, B*HW)      im2col slab, K=9*Cin zero-padded to Kp (compute dtype)
    # wc_ref      : (Cmid, Kp)      conv weight, (tap,cin) flattened + zero-padded (compute dtype)
    # cb_ref      : (Cmid, 1)       conv bias column (fp32)
    # pool_ref    : (B, B*HW)       block-structured GAP matrix, 1/HW per image span (fp32)
    # w1/b1       : (Cmid, mid) / (1, mid)        GapResnet final fc (fp32)
    # w2/b2       : (mid, out_pad) / (1, out_pad) FeatureExtractor.fc, lane-padded (fp32)
    # o_ref       : (B, out_pad)    L2-normalised embeddings (lane-dense, 128-mult)

    # 3x3 conv (stride 1, pad 1) for the WHOLE batch as one MXU matmul:
    #   (Cmid, Kp) @ (Kp, B*HW) -> (Cmid, B*HW), fp32 accumulation.
    acc = jnp.dot(wc_ref[...], patches_ref[...],
                  preferred_element_type=jnp.float32)
    acc = jnp.maximum(acc + cb_ref[...], 0.0)                 # bias + ReLU

    # Global average pool on the MXU: contract the shared lane axis of the
    # (B, B*HW) pooling matrix and the (Cmid, B*HW) activations -> (B, Cmid).
    feat = lax.dot_general(
        pool_ref[...], acc,
        dimension_numbers=(((1,), (1,)), ((), ())),
        preferred_element_type=jnp.float32)

    # Head: GapResnet fc -> FeatureExtractor.fc -> L2 normalise (EUP rsqrt).
    h = jnp.dot(feat, w1_ref[...], preferred_element_type=jnp.float32) + b1_ref[...]
    h = jnp.dot(h, w2_ref[...], preferred_element_type=jnp.float32) + b2_ref[...]
    ssum = jnp.sum(h * h, axis=1, keepdims=True)
    o_ref[...] = (h * lax.rsqrt(ssum + 1e-12)).astype(o_ref.dtype)


def _im2col_batched(x_nchw):
    """(B, Cin, H, W) -> (9*Cin, B*H*W) patches for a 3x3 / stride-1 / pad-1 conv.

    Pure layout plumbing done in XLA; the kernel sees one lane-dense slab with
    the batch folded into the lane axis (lane index = b*HW + spatial position).
    """
    B, Cin, H, W = x_nchw.shape
    xp = jnp.pad(x_nchw, ((0, 0), (0, 0), (1, 1), (1, 1)))
    cols = [xp[:, :, kh:kh + H, kw:kw + W].reshape(B, Cin, H * W)
            for kh in range(3) for kw in range(3)]
    pat = jnp.concatenate(cols, axis=1)                 # (B, 9*Cin, HW)
    return pat.transpose(1, 0, 2).reshape(9 * Cin, B * H * W)


def _round_up(n, m):
    return ((n + m - 1) // m) * m


@functools.partial(jax.jit, static_argnames=("compute_dtype",))
def feature_extractor(x_nchw, params, compute_dtype=jnp.bfloat16):
    """x_nchw: (B, Cin, H, W) fp32 -> (B, out_dim) L2-normalised embeddings.

    compute_dtype controls the conv MXU operand dtype (fp32 accumulation either
    way). bfloat16 (default) is the v6e/v7x throughput path; fp32 is exact.
    """
    wc, cb, w1, b1, w2, b2 = params
    B, Cin, H, W = x_nchw.shape
    HW = H * W
    BHW = B * HW
    Cmid = wc.shape[3]
    mid_dim = w1.shape[1]
    out_dim = w2.shape[1]

    # --- layout plumbing in XLA (no in-kernel relayout copies) ---------------
    K = 9 * Cin
    Kp = _round_up(K, 16)                               # sublane-aligned contraction dim
    out_pad = _round_up(out_dim, 128)                   # lane-dense output width

    patches = _im2col_batched(x_nchw).astype(compute_dtype)       # (K, B*HW)
    patches = jnp.pad(patches, ((0, Kp - K), (0, 0)))             # (Kp, B*HW)
    wc_r = wc.reshape(K, Cmid).T.astype(compute_dtype)            # (Cmid, K)
    wc_r = jnp.pad(wc_r, ((0, 0), (0, Kp - K)))                   # (Cmid, Kp)
    cb_col = cb.reshape(Cmid, 1).astype(jnp.float32)              # (Cmid, 1)

    # Block-structured GAP matrix: pool[b, b*HW + p] = 1/HW.
    pool = (jnp.kron(jnp.eye(B, dtype=jnp.float32),
                     jnp.ones((1, HW), jnp.float32)) / HW)        # (B, B*HW)

    # Zero-padded fc so the L2 norm over the padded slab equals the real one
    # (padded columns of h are exactly zero).
    w2_p = jnp.pad(w2.astype(jnp.float32), ((0, 0), (0, out_pad - out_dim)))
    b2_p = jnp.pad(b2.astype(jnp.float32), ((0, 0), (0, out_pad - out_dim)))

    out_padded = pl.pallas_call(
        fused_kernel,
        out_shape=jax.ShapeDtypeStruct((B, out_pad), jnp.float32),
        grid=(1,),
        in_specs=[
            pl.BlockSpec((Kp, BHW),          lambda i: (0, 0)),
            pl.BlockSpec((Cmid, Kp),         lambda i: (0, 0)),
            pl.BlockSpec((Cmid, 1),          lambda i: (0, 0)),
            pl.BlockSpec((B, BHW),           lambda i: (0, 0)),
            pl.BlockSpec((Cmid, mid_dim),    lambda i: (0, 0)),
            pl.BlockSpec((1, mid_dim),       lambda i: (0, 0)),
            pl.BlockSpec((mid_dim, out_pad), lambda i: (0, 0)),
            pl.BlockSpec((1, out_pad),       lambda i: (0, 0)),
        ],
        out_specs=pl.BlockSpec((B, out_pad), lambda i: (0, 0)),
        compiler_params=pltpu.CompilerParams(
            dimension_semantics=("arbitrary",)),
    )(patches, wc_r, cb_col, pool, w1.astype(jnp.float32),
      b1.astype(jnp.float32), w2_p, b2_p)

    return out_padded[:, :out_dim]


def reference(x_nchw, params, compute_dtype=jnp.float32):
    """Pure-JAX reference matching the PyTorch forward semantics."""
    wc, cb, w1, b1, w2, b2 = params
    # Mirror the kernel's operand rounding when the bf16 MXU path is used
    # (fp32 accumulation either way).
    xr = x_nchw.astype(compute_dtype).astype(jnp.float32)
    wcr = wc.astype(compute_dtype).astype(jnp.float32)
    x = jnp.transpose(xr, (0, 2, 3, 1))
    xp = jnp.pad(x, ((0, 0), (1, 1), (1, 1), (0, 0)))
    B, H, W, Cin = x.shape
    Cmid = wc.shape[3]
    conv = jnp.zeros((B, H, W, Cmid), jnp.float32)
    for kh in range(3):
        for kw in range(3):
            conv = conv + jnp.einsum('bhwc,cd->bhwd',
                                     xp[:, kh:kh + H, kw:kw + W, :], wcr[kh, kw])
    conv = jnp.maximum(conv + cb.reshape(1, 1, 1, -1), 0.0)
    feat = conv.mean(axis=(1, 2))                        # GAP
    h = feat @ w1 + b1                                   # backbone head
    h = h @ w2 + b2                                      # fc
    l = jnp.sqrt(jnp.sum(h * h, axis=1, keepdims=True))  # L2 normalise
    return h / l


if __name__ == "__main__":
    B, Cin, H, W = 2, 4, 16, 16
    Cmid, mid_dim, out_dim = 8, 32, 16

    key = jax.random.PRNGKey(0)
    kx, kwc, kcb, kw1, kb1, kw2, kb2 = jax.random.split(key, 7)

    x = jax.random.normal(kx, (B, Cin, H, W), jnp.float32)
    wc = 0.1 * jax.random.normal(kwc, (3, 3, Cin, Cmid), jnp.float32)
    cb = 0.1 * jax.random.normal(kcb, (1, Cmid), jnp.float32)
    w1 = 0.1 * jax.random.normal(kw1, (Cmid, mid_dim), jnp.float32)
    b1 = 0.1 * jax.random.normal(kb1, (1, mid_dim), jnp.float32)
    w2 = 0.1 * jax.random.normal(kw2, (mid_dim, out_dim), jnp.float32)
    b2 = 0.1 * jax.random.normal(kb2, (1, out_dim), jnp.float32)
    params = (wc, cb, w1, b1, w2, b2)

    # fp32 path — checked tightly against the fp32 reference.
    out_f32 = feature_extractor(x, params, compute_dtype=jnp.float32)
    jax.block_until_ready(out_f32)
    ref_f32 = reference(x, params, compute_dtype=jnp.float32)
    assert out_f32.shape == (B, out_dim)
    assert jnp.allclose(out_f32, ref_f32, atol=1e-4, rtol=1e-4), "fp32 mismatch vs reference"
    assert jnp.allclose(jnp.sum(out_f32 * out_f32, axis=1), 1.0, atol=1e-4)

    # Default bf16 MXU path (v6e/v7x): fp32 accumulation; compared against a
    # reference whose conv operands are rounded to bf16 the same way.
    out_bf16 = feature_extractor(x, params)
    jax.block_until_ready(out_bf16)
    ref_bf16 = reference(x, params, compute_dtype=jnp.bfloat16)
    assert out_bf16.shape == (B, out_dim)
    assert jnp.allclose(out_bf16, ref_bf16, atol=5e-3, rtol=5e-3), \
        "bf16 mismatch vs reference"
    assert jnp.allclose(jnp.sum(out_bf16 * out_bf16, axis=1), 1.0, atol=1e-3)

    print("KERNEL_OK")
</pallas_src>

<mosaic_0001>
module attributes {stable_mosaic.version = 11 : i64} {
  func.func @fused_kernel(%arg0: i32, %arg1: memref<48x512xf32, #tpu.memory_space<vmem>>, %arg2: memref<8x48xf32, #tpu.memory_space<vmem>>, %arg3: memref<8x1xf32, #tpu.memory_space<vmem>>, %arg4: memref<2x512xf32, #tpu.memory_space<vmem>>, %arg5: memref<8x32xf32, #tpu.memory_space<vmem>>, %arg6: memref<1x32xf32, #tpu.memory_space<vmem>>, %arg7: memref<32x128xf32, #tpu.memory_space<vmem>>, %arg8: memref<1x128xf32, #tpu.memory_space<vmem>>, %arg9: memref<2x128xf32, #tpu.memory_space<vmem>>) attributes {dimension_semantics = [#tpu.dimension_semantics<arbitrary>], iteration_bounds = array<i64: 1>, scalar_prefetch = 0 : i64, scratch_operands = 0 : i64, tpu.core_type = #tpu.core_type<tc>, window_params = [{pipeline_mode = #tpu.pipeline_mode<synchronous>, transform_indices = @transform_0, window_bounds = array<i64: 48, 512>}, {pipeline_mode = #tpu.pipeline_mode<synchronous>, transform_indices = @transform_1, window_bounds = array<i64: 8, 48>}, {pipeline_mode = #tpu.pipeline_mode<synchronous>, transform_indices = @transform_2, window_bounds = array<i64: 8, 1>}, {pipeline_mode = #tpu.pipeline_mode<synchronous>, transform_indices = @transform_3, window_bounds = array<i64: 2, 512>}, {pipeline_mode = #tpu.pipeline_mode<synchronous>, transform_indices = @transform_4, window_bounds = array<i64: 8, 32>}, {pipeline_mode = #tpu.pipeline_mode<synchronous>, transform_indices = @transform_5, window_bounds = array<i64: 1, 32>}, {pipeline_mode = #tpu.pipeline_mode<synchronous>, transform_indices = @transform_6, window_bounds = array<i64: 32, 128>}, {pipeline_mode = #tpu.pipeline_mode<synchronous>, transform_indices = @transform_7, window_bounds = array<i64: 1, 128>}, {pipeline_mode = #tpu.pipeline_mode<synchronous>, transform_indices = @transform_8, window_bounds = array<i64: 2, 128>}]} {
    %c0 = arith.constant 0 : index
    %c0_0 = arith.constant 0 : index
    %0 = vector.load %arg2[%c0, %c0_0] : memref<8x48xf32, #tpu.memory_space<vmem>>, vector<8x48xf32>
    %c0_1 = arith.constant 0 : index
    %c0_2 = arith.constant 0 : index
    %1 = vector.load %arg1[%c0_1, %c0_2] : memref<48x512xf32, #tpu.memory_space<vmem>>, vector<48x512xf32>
    %cst = arith.constant dense<0.000000e+00> : vector<8x512xf32>
    %2 = tpu.matmul %0, %1, %cst {dimension_numbers = #tpu.dot_dimension_numbers<[1], [0], [0], [1], [0, 0, 1, 1], [], []>} : vector<8x48xf32>, vector<48x512xf32>, vector<8x512xf32> -> vector<8x512xf32>
    %c0_3 = arith.constant 0 : index
    %c0_4 = arith.constant 0 : index
    %3 = vector.load %arg3[%c0_3, %c0_4] : memref<8x1xf32, #tpu.memory_space<vmem>>, vector<8x1xf32>
    %4 = vector.broadcast %3 : vector<8x1xf32> to vector<8x512xf32>
    %5 = arith.addf %2, %4 : vector<8x512xf32>
    %cst_5 = arith.constant 0.000000e+00 : f32
    %6 = vector.broadcast %cst_5 : f32 to vector<8x512xf32>
    %7 = arith.maximumf %5, %6 : vector<8x512xf32>
    %c0_6 = arith.constant 0 : index
    %c0_7 = arith.constant 0 : index
    %8 = vector.load %arg4[%c0_6, %c0_7] : memref<2x512xf32, #tpu.memory_space<vmem>>, vector<2x512xf32>
    %cst_8 = arith.constant dense<0.000000e+00> : vector<2x8xf32>
    %9 = tpu.matmul %8, %7, %cst_8 {dimension_numbers = #tpu.dot_dimension_numbers<[1], [1], [0], [0], [0, 0, 1, 0], [], []>} : vector<2x512xf32>, vector<8x512xf32>, vector<2x8xf32> -> vector<2x8xf32>
    %c0_9 = arith.constant 0 : index
    %c0_10 = arith.constant 0 : index
    %10 = vector.load %arg5[%c0_9, %c0_10] : memref<8x32xf32, #tpu.memory_space<vmem>>, vector<8x32xf32>
    %cst_11 = arith.constant dense<0.000000e+00> : vector<2x32xf32>
    %11 = tpu.matmul %9, %10, %cst_11 {dimension_numbers = #tpu.dot_dimension_numbers<[1], [0], [0], [1], [0, 0, 1, 1], [], []>} : vector<2x8xf32>, vector<8x32xf32>, vector<2x32xf32> -> vector<2x32xf32>
    %c0_12 = arith.constant 0 : index
    %c0_13 = arith.constant 0 : index
    %12 = vector.load %arg6[%c0_12, %c0_13] : memref<1x32xf32, #tpu.memory_space<vmem>>, vector<1x32xf32>
    %13 = vector.broadcast %12 : vector<1x32xf32> to vector<2x32xf32>
    %14 = arith.addf %11, %13 : vector<2x32xf32>
    %c0_14 = arith.constant 0 : index
    %c0_15 = arith.constant 0 : index
    %15 = vector.load %arg7[%c0_14, %c0_15] : memref<32x128xf32, #tpu.memory_space<vmem>>, vector<32x128xf32>
    %cst_16 = arith.constant dense<0.000000e+00> : vector<2x128xf32>
    %16 = tpu.matmul %14, %15, %cst_16 {dimension_numbers = #tpu.dot_dimension_numbers<[1], [0], [0], [1], [0, 0, 1, 1], [], []>} : vector<2x32xf32>, vector<32x128xf32>, vector<2x128xf32> -> vector<2x128xf32>
    %c0_17 = arith.constant 0 : index
    %c0_18 = arith.constant 0 : index
    %17 = vector.load %arg8[%c0_17, %c0_18] : memref<1x128xf32, #tpu.memory_space<vmem>>, vector<1x128xf32>
    %18 = vector.broadcast %17 : vector<1x128xf32> to vector<2x128xf32>
    %19 = arith.addf %16, %18 : vector<2x128xf32>
    %20 = arith.mulf %19, %19 : vector<2x128xf32>
    %cst_19 = arith.constant dense<0.000000e+00> : vector<2xf32>
    %21 = vector.multi_reduction <add>, %20, %cst_19 [1] : vector<2x128xf32> to vector<2xf32>
    %22 = vector.shape_cast %21 : vector<2xf32> to vector<2x1xf32>
    %cst_20 = arith.constant 9.99999996E-13 : f32
    %23 = vector.broadcast %cst_20 : f32 to vector<2x1xf32>
    %24 = arith.addf %22, %23 : vector<2x1xf32>
    %25 = math.rsqrt %24 : vector<2x1xf32>
    %26 = vector.broadcast %25 : vector<2x1xf32> to vector<2x128xf32>
    %27 = arith.mulf %19, %26 : vector<2x128xf32>
    %c0_21 = arith.constant 0 : index
    %c0_22 = arith.constant 0 : index
    %28 = vector.load %arg9[%c0_21, %c0_22] : memref<2x128xf32, #tpu.memory_space<vmem>>, vector<2x128xf32>
    tpu.vector_store %arg9[%c0_21, %c0_22], %27 {strides = array<i32>} : memref<2x128xf32, #tpu.memory_space<vmem>>, vector<2x128xf32>,
    return
  }
  func.func @transform_0(%arg0: i32) -> (i32, i32) {
    %c0_i32 = arith.constant 0 : i32
    %c0_i32_0 = arith.constant 0 : i32
    %c0_i32_1 = arith.constant 0 : i32
    return %c0_i32, %c0_i32_0 : i32, i32
  }
  func.func @transform_1(%arg0: i32) -> (i32, i32) {
    %c0_i32 = arith.constant 0 : i32
    %c0_i32_0 = arith.constant 0 : i32
    %c0_i32_1 = arith.constant 0 : i32
    return %c0_i32, %c0_i32_0 : i32, i32
  }
  func.func @transform_2(%arg0: i32) -> (i32, i32) {
    %c0_i32 = arith.constant 0 : i32
    %c0_i32_0 = arith.constant 0 : i32
    %c0_i32_1 = arith.constant 0 : i32
    return %c0_i32, %c0_i32_0 : i32, i32
  }
  func.func @transform_3(%arg0: i32) -> (i32, i32) {
    %c0_i32 = arith.constant 0 : i32
    %c0_i32_0 = arith.constant 0 : i32
    %c0_i32_1 = arith.constant 0 : i32
    return %c0_i32, %c0_i32_0 : i32, i32
  }
  func.func @transform_4(%arg0: i32) -> (i32, i32) {
    %c0_i32 = arith.constant 0 : i32
    %c0_i32_0 = arith.constant 0 : i32
    %c0_i32_1 = arith.constant 0 : i32
    return %c0_i32, %c0_i32_0 : i32, i32
  }
  func.func @transform_5(%arg0: i32) -> (i32, i32) {
    %c0_i32 = arith.constant 0 : i32
    %c0_i32_0 = arith.constant 0 : i32
    %c0_i32_1 = arith.constant 0 : i32
    return %c0_i32, %c0_i32_0 : i32, i32
  }
  func.func @transform_6(%arg0: i32) -> (i32, i32) {
    %c0_i32 = arith.constant 0 : i32
    %c0_i32_0 = arith.constant 0 : i32
    %c0_i32_1 = arith.constant 0 : i32
    return %c0_i32, %c0_i32_0 : i32, i32
  }
  func.func @transform_7(%arg0: i32) -> (i32, i32) {
    %c0_i32 = arith.constant 0 : i32
    %c0_i32_0 = arith.constant 0 : i32
    %c0_i32_1 = arith.constant 0 : i32
    return %c0_i32, %c0_i32_0 : i32, i32
  }
  func.func @transform_8(%arg0: i32) -> (i32, i32) {
    %c0_i32 = arith.constant 0 : i32
    %c0_i32_0 = arith.constant 0 : i32
    %c0_i32_1 = arith.constant 0 : i32
    return %c0_i32, %c0_i32_0 : i32, i32
  }
}

</mosaic_0001>

<bundles_post_ra>
// kernel: feature_extractor.1
= control target key start
LH: loop header
LB: loop body
LE: loop exit
PB: predicated region body
PF: predicated region fallthrough
CT: control target
= control target key end

     0   :  { %v659_v7 = vmov 0.0   ;;  %v660_v13 = vmov 0   ;;  %s829_s0 = inlined_call_operand.vmem [shape: f32[48,512], index: 0, kind: input, shape index: {}]   ;;  %s830_s1 = inlined_call_operand.vmem [shape: f32[8,48], index: 1, kind: input, shape index: {}]   ;;  %s831_s2 = inlined_call_operand.vmem [shape: f32[8,1], index: 2, kind: input, shape index: {}]   ;;  %s832_s3 = inlined_call_operand.vmem [shape: f32[2,512], index: 3, kind: input, shape index: {}]   ;;  %s833_s4 = inlined_call_operand.vmem [shape: f32[8,32], index: 4, kind: input, shape index: {}]   ;;  %s834_s5 = inlined_call_operand.vmem [shape: f32[1,32], index: 5, kind: input, shape index: {}]   ;;  %s835_s6 = inlined_call_operand.vmem [shape: f32[32,128], index: 6, kind: input, shape index: {}]   ;;  %s836_s7 = inlined_call_operand.vmem [shape: f32[1,128], index: 7, kind: input, shape index: {}]   ;;  %s837_s8 = inlined_call_operand.hbm [shape: f32[2,128], index: 8, kind: output, shape index: {}]  }
   0x1   :  { %v32_v0 = vld [vmem:[%s829_s0 + $0x8] sm:$0xff]  ;;  %v34_v2 = vld [vmem:[%s829_s0 + $0x18] sm:$0xff]  ;;  %v31_v5 = vld [vmem:[%s829_s0] sm:$0xff]  ;;  %129 = vmatprep.mubr.f32.mxu0 %v659_v7  ;;  %200 = vmatprep.mubr.f32.mxu1 %v659_v7 }
   0x2   :  { %v36_v1 = vld [vmem:[%s829_s0 + $0x28] sm:$0xff]  ;;  %v38_v4 = vld [vmem:[%s829_s0 + $0x38] sm:$0xff]  ;;  %v35_v6 = vld [vmem:[%s829_s0 + $0x20] sm:$0xff]  ;;  %631 = vset.pattern.permute.xlu0 %v660_v13 }
   0x3   :  { %v593_v3 = vpack.c.bf16 %v36_v1, %v32_v0  ;;  %v605_v8 = vpack.c.bf16 %v38_v4, %v34_v2  ;;  %v595_v9 = vpack.c.bf16 %v35_v6, %v31_v5  ;;  %v33_v10 = vld [vmem:[%s829_s0 + $0x10] sm:$0xff]  ;;  %v40_v12 = vld [vmem:[%s829_s0 + $0x48] sm:$0xff]  ;;  %v42_v16 = vld [vmem:[%s829_s0 + $0x58] sm:$0xff] }
   0x4   :  { %v37_v11 = vld [vmem:[%s829_s0 + $0x30] sm:$0xff]  ;;  %v44_v15 = vld [vmem:[%s829_s0 + $0x68] sm:$0xff]  ;;  %v46_v17 = vld [vmem:[%s829_s0 + $0x78] sm:$0xff] }
   0x5   :  { %594 = vmatprep.subr.bf16.mxu0 %v593_v3  ;;  %v607_v14 = vpack.c.bf16 %v37_v11, %v33_v10  ;;  %606 = vmatprep.subr.bf16.mxu1 %v605_v8  ;;  %v597_v18 = vpack.c.bf16 %v44_v15, %v40_v12  ;;  %v609_v19 = vpack.c.bf16 %v46_v17, %v42_v16  ;;  %v39_v20 = vld [vmem:[%s829_s0 + $0x40] sm:$0xff]  ;;  %v41_v22 = vld [vmem:[%s829_s0 + $0x50] sm:$0xff]  ;;  %v48_v25 = vld [vmem:[%s829_s0 + $0x88] sm:$0xff] }
   0x6   :  { %596 = vmatpush1.bf16.msra.mxu0 %v595_v9  ;;  %v43_v21 = vld [vmem:[%s829_s0 + $0x60] sm:$0xff]  ;;  %v45_v24 = vld [vmem:[%s829_s0 + $0x70] sm:$0xff]  ;;  %v52_v26 = vld [vmem:[%s829_s0 + $0xa8] sm:$0xff] }
   0x7   :  { %608 = vmatpush1.bf16.msra.mxu1 %v607_v14  ;;  %v599_v23 = vpack.c.bf16 %v43_v21, %v39_v20  ;;  %598 = vmatprep.subr.bf16.mxu0 %v597_v18  ;;  %v611_v27 = vpack.c.bf16 %v45_v24, %v41_v22  ;;  %v601_v28 = vpack.c.bf16 %v52_v26, %v48_v25  ;;  %v50_v29 = vld [vmem:[%s829_s0 + $0x98] sm:$0xff]  ;;  %v47_v31 = vld [vmem:[%s829_s0 + $0x80] sm:$0xff]  ;;  %v49_v34 = vld [vmem:[%s829_s0 + $0x90] sm:$0xff] }
   0x8   :  { %610 = vmatprep.subr.bf16.mxu1 %v609_v19  ;;  %v54_v30 = vld [vmem:[%s829_s0 + $0xb8] sm:$0xff]  ;;  %v51_v33 = vld [vmem:[%s829_s0 + $0xa0] sm:$0xff]  ;;  %v53_v35 = vld [vmem:[%s829_s0 + $0xb0] sm:$0xff] }
   0x9   :  { %v613_v32 = vpack.c.bf16 %v54_v30, %v50_v29  ;;  %v603_v36 = vpack.c.bf16 %v51_v33, %v47_v31  ;;  %v55_v37 = vld [vmem:[%s831_s2] sm:$0xff] }
   0xa   :  { %600 = vmatpush1.bf16.msra.mxu0 %v599_v23 }
   0xb   :  { %13 = vsyncpa [#allocation3], 0  ;;  %612 = vmatpush1.bf16.msra.mxu1 %v611_v27  ;;  %602 = vmatprep.subr.bf16.mxu0 %v601_v28  ;;  %v615_v38 = vpack.c.bf16 %v53_v35, %v49_v34  ;;  %v30_v39 = vld [vmem:[%s830_s1] sm:$0xff]  ;;  %vm61_vm0 = vcmask 392192   ;;  %v661_v40 = vmov 1983009808   ;;  %v217_v42 = vlaneseq }
   0xc   :  { %614 = vmatprep.subr.bf16.mxu1 %v613_v32  ;;  %58 = vperm.xlu0 %631, %v55_v37   ;;  %v215_v41 = vunpack.c.l.s4 %v661_v40  ;;  %v211_v46 = vld [vmem:[%s832_s3] sm:$0xff]  ;;  %vm662_vm1 = vmmov 0   ;;  %v663_v2 = vmov 0.0|0.0   ;;  %v457_v4 = vld [vmem:[%s835_s6 + $0x8] sm:$0xff]  ;;  %vm382_vm2 = vcmask 64512   ;;  %v458_v9 = vld [vmem:[%s835_s6 + $0x10] sm:$0xff] }
   0xd   :  { %v218_v44 = vshrl.u32 %v217_v42, 7  ;;  %v213_v49 = vcombine.high %v211_v46, %v211_v46  ;;  %v374_v51 = vld [vmem:[%s833_s4] sm:$0xff]  ;;  %v459_v10 = vld [vmem:[%s835_s6 + $0x18] sm:$0xff]  ;;  %vm467_vm3 = vcmask 261120   ;;  %vm542_vm4 = vcmask 1041408  }
   0xe   :  { %604 = vmatpush1.bf16.msra.mxu0 %v603_v36  ;;  %v216_v43 = vunpack.c.0.s8 %v215_v41  ;;  %v456_v3 = vld [vmem:[%s835_s6] sm:$0xff]  ;;  %v621_v11 = vpack.c.bf16 %v459_v10, %v458_v9 }
   0xf   :  { %616 = vmatpush1.bf16.msra.mxu1 %v615_v38  ;;  %v618_v5 = vpack.c.bf16 %v457_v4, %v456_v3  ;;  %v566_v12 = vld [vmem:[%s834_s5] ss:$0 sm:$0xff]  ;;  %s664_s5 = smov [#allocation2]  }
  0x10   :  { %577 = vmatprep.subr.mxu1 %v659_v7  ;;  %v219_v45 = vsub.s32 %v216_v43, %v218_v44  ;;  %s556_s6 = sshll.u32 %s664_s5, 4  ;;  %s557_s6 = int_to_ptr.vmem [resolvable:$true] %s556_s6 }
  0x11   :  { %564 = vmatmul.mubr.msk.f32.vlgmr.msra.gmra.mrb[0].mxu0 %vm61_vm0, %v30_v39  ;;  %s635_s24 = scalar_lea.vmem %s557_s6, 32  ;;  %p640_p1 = scmp.lt.s32.totalorder %s557_s6, %s557_s6 }
  0x12   :  { %565 = vmatmul.mubr.msk.f32.vlgmr.msra.gmra.mrb[0].mxu1 %vm61_vm0, %v30_v39  ;;  %v220_v47 = vrot.slane %v211_v46, %v219_v45  ;;  %v227_v50 = vrot.slane %v213_v49, %v219_v45  ;;  %p636_p0 = scmp.ne.s32.totalorder %s557_s6, %s635_s24  ;;  %p641_p2 = scmp.lt.s32.totalorder %s635_s24, %s635_s24 }
  0x13   :  { %578 = vmatpush3.msra.mxu1 %v374_v51  ;;  %579 = vmatprep.mubr.msk.f32.mxu1 %vm662_vm1, %v659_v7 }
  0x14   :  { %v228_v48 = vcombine.high %v220_v47, %v220_v47  ;;  %v229_v0 = vcombine.high %v227_v50, %v227_v50  ;;  %617 = vmatprep.subr.bf16.mxu1 %v663_v2  ;;  %p642_p3 = por %p641_p2, %p640_p1 }
  0x16   :  { %298 = vmatprep.mubr.f32.mxu0 %v228_v48  ;;  %p643_p4 = pnand %p642_p3, %p636_p0 }
  0x8b   :  { %v59_v52 = vpop.permute.xlu0 %58 }
  0xe4   :  { %v131_v53 = vpop.f32.mrb[0].mxu0 }
  0xe5   :  { %v132_v54 = vadd.f32 %v131_v53, %v59_v52  ;;  %v202_v55 = vpop.f32.mrb[0].mxu1  ;;  %v133_v56 = vpop.f32.mrb[1].mxu0 }
  0xe6   :  { %v134_v57 = vadd.f32 %v133_v56, %v59_v52  ;;  %v204_v58 = vpop.f32.mrb[1].mxu1  ;;  %v203_v62 = vadd.f32 %v202_v55, %v59_v52 }
  0xe7   :  { %v205_v59 = vadd.f32 %v204_v58, %v59_v52  ;;  %v207_v61 = vmax.f32 %v132_v54, 0.0 }
  0xe8   :  { %v208_v60 = vmax.f32 %v134_v57, 0.0  ;;  %v209_v1 = vmax.f32 %v203_v62, 0.0 }
  0xe9   :  { %v210_v63 = vmax.f32 %v205_v59, 0.0 }
  0xea   :  { %234 = vmatprep.subr.mxu0 %v208_v60 }
  0xeb   :  { %235 = vmatpush1.xpose.msra.mxu0 %v207_v61 }
  0xec   :  { %304 = vmatprep.subr.mxu0 %v210_v63 }
  0xee   :  { %299 = vmatmul.mubr.f32.vlgmr.msra.gmra.mrb[2].mxu0 %v220_v47 }
  0xef   :  { %305 = vmatpush1.xpose.msra.mxu0 %v209_v1  ;;  %368 = vmatprep.mubr.f32.mxu0 %v229_v0 }
  0xf6   :  { %369 = vmatmul.mubr.f32.vlgmr.msra.gmra.mrb[2].mxu0 %v227_v50 }
 0x1c9   :  { %v370_v6 = vpop.f32.mrb[2].mxu0 }
 0x1ca   :  { %v372_v8 = vpop.f32.mrb[3].mxu0  ;;  %580 = vmatmul.mubr.msk.f32.vlgmr.msra.gmra.mrb[2].mxu1 %vm382_vm2, %v370_v6 }
 0x1cb   :  { %619 = vmatpush3.bf16.msra.mxu1 %v618_v5  ;;  %590 = vmatprep.mubr.msk.f32.mxu1 %vm662_vm1, %v659_v7  ;;  %v568_v7 = vld [vmem:[%s836_s7] ss:$0 sm:$0xff] }
 0x1cc   :  { %620 = vmatprep.subr.bf16.mxu1 %v663_v2 }
 0x1cf   :  { %622 = vmatpush3.bf16.msra.mxu1 %v621_v11 }
 0x29d   :  { %v452_v13 = vpop.f32.mrb[2].mxu1 }
 0x29e   :  { %v453_v14 = vadd.f32 %v566_v12, %v452_v13  ;;  %v581_v15 = vpop.f32.mrb[3].mxu1 }
 0x2a0   :  { %591 = vmatmul.mubr.msk.f32.vlgmr.msra.gmra.mrb[4].mxu1 %vm467_vm3, %v453_v14 }
 0x373   :  { %v537_v16 = vpop.f32.mrb[4].mxu1 }
 0x374   :  { %v538_v17 = vadd.f32 %v568_v7, %v537_v16  ;;  %v592_v18 = vpop.f32.mrb[5].mxu1 }
 0x376   :  { %v541_v19 = vmul.f32 %v538_v17, %v538_v17 }
 0x378   :  { %v543_v20 = vsel %vm542_vm4, %v541_v19, 0.0 }
 0x379   :  { %544 = vadd.xlane.f32.xlu0 %v543_v20 }
 0x406   :  { %v545_v21 = vpop.xlane.xlu0 %544 }
 0x407   :  { %v546_v22 = vadd.f32 1e-12, %v545_v21 }
 0x409   :  { %633 = vrsqrt.f32 %v546_v22 }
 0x413   :  { %v634_v23 = vpop.eup %633 }
 0x414   :  { %v548_v24 = vmul.f32 %v634_v23, %v538_v17 }
 0x416   :  { %549 = vst [vmem:[#allocation2] sm:$0x3] %v548_v24 }
 0x417   :  { %646 = shalt.err (!%p643_p4)
}
 0x418   :  { %s647_s26 = scalar_lea.hbm %s837_s8, 32 }
 0x419   :  { %p648_p5 = scmp.ne.s32.totalorder %s837_s8, %s647_s26  ;;  %p651_p6 = scmp.lt.u32.totalorder %s647_s26, %s837_s8 }
 0x41b   :  { %p653_p7 = pnand %p651_p6, %p648_p5 }
 0x41d   :  { %656 = shalt.err (!%p653_p7)
}
 0x41e   :  { %559 = dma.vmem_to_hbm [thread:$0]  %s557_s6, 32, %s837_s8, [#allocation3]  }
 0x41f   :  { %657 = dma.done.wait [#allocation3], 32  }
 0x420   :  { %658 = vsyncadd [#allocation3], 4294967264 }
 0x421   :  { %563 = vsyncpa [#allocation3], 1 }

</bundles_post_ra>
